<compile_context>
chip_gen: v7x
topology: tpu7x:2x2x1
jax: 0.10.0
libtpu: 0.0.40
codegen_flags: <defaults>
</compile_context>

<pallas_src>
import jax
import jax.numpy as jnp
from jax import lax
from jax.experimental import pallas as pl
from jax.experimental.pallas import tpu as pltpu


def recsys_kernel(uidx_ref, midx_ref, stab_ref, o_ref):
    """One batch tile.

    uidx_ref : (1, TB)  int32  user ids for this tile
    midx_ref : (1, TB)  int32  movie ids, pre-offset by n_users in the wrapper
    stab_ref : (1, N)   f32/bf16  folded scores [w_u^T@utab + b, w_m^T@mtab], N = Nu+Nm
    o_ref    : (1, TB)  f32    lane-dense output row of scores
    """
    uidx = uidx_ref[...]                                   # (1, TB) int32
    midx = midx_ref[...]                                   # (1, TB) int32 (already +Nu)
    n_total = stab_ref.shape[1]
    tb = uidx.shape[1]

    # Single two-hot selection matrix: row uid and row (Nu + mid) are 1.
    row_ids = lax.broadcasted_iota(jnp.int32, (n_total, tb), 0)
    twohot = jnp.logical_or(row_ids == uidx, row_ids == midx).astype(stab_ref.dtype)

    # Skinny (1, N) x (N, TB) matmul: score = s_u[uid] + b + s_m[mid].
    o_ref[...] = jnp.dot(stab_ref[...], twohot,
                         preferred_element_type=jnp.float32).astype(o_ref.dtype)


def recsys_forward(users, movies, params, *, tb=512, mxu_dtype=jnp.float32):
    """Equivalent of RecSysModel.forward(users, movies) -> (B, 1) float32."""
    utab_t = params["user_embed_t"]      # (E, Nu) feature-major
    mtab_t = params["movie_embed_t"]     # (E, Nm) feature-major
    w_u = params["w_u"]                  # (E, 1)
    w_m = params["w_m"]                  # (E, 1)
    b = params["b"]                      # (1,)

    e, n_users = utab_t.shape
    _, n_movies = mtab_t.shape
    n_total = n_users + n_movies
    batch = users.shape[0]

    # --- fold Linear(2E,1) into the tables once (wrapper-side, tiny GEMV) ----
    s_u = w_u[:, 0] @ utab_t             # (Nu,)  = per-user  w_u . embed
    s_m = w_m[:, 0] @ mtab_t             # (Nm,)  = per-movie w_m . embed
    s_all = jnp.concatenate([s_u + b[0], s_m], axis=0)          # bias folded into user half
    s_all = s_all.reshape(1, n_total).astype(mxu_dtype)          # (1, Nu+Nm)

    # --- batch tiling (lane-dense TB, multiple of 128) -----------------------
    tb = max(128, min(tb, pl.cdiv(batch, 128) * 128))
    num_tiles = pl.cdiv(batch, tb)
    padded = num_tiles * tb

    uidx = jnp.clip(users.astype(jnp.int32), 0, n_users - 1)
    midx = jnp.clip(movies.astype(jnp.int32), 0, n_movies - 1)
    uidx = jnp.pad(uidx, (0, padded - batch)).reshape(num_tiles, tb)
    midx = jnp.pad(midx, (0, padded - batch)).reshape(num_tiles, tb) + n_users

    # --- explicit VMEM budget -------------------------------------------------
    bpe = jnp.dtype(mxu_dtype).itemsize
    need = (
        n_total * bpe                    # folded table, single-buffered
        + 2 * 2 * tb * 4                 # two (1, TB) int32 index blocks, double-buffered
        + 2 * tb * 4                     # (1, TB) f32 output block, double-buffered
        + n_total * tb * 4               # iota intermediate (int32)
        + n_total * tb * bpe             # two-hot intermediate
        + n_total * tb * 4               # compare/matmul temporaries headroom
    )
    # Floor at 16 MiB; cap at 100 MiB (on v7x keep `need` under ~48 MiB by
    # shrinking tb — its per-core VMEM is 64 MiB and tables duplicate per TC).
    vmem_limit = int(min(max(need + (2 << 20), 16 << 20), 100 << 20))

    out = pl.pallas_call(
        recsys_kernel,
        out_shape=jax.ShapeDtypeStruct((num_tiles, tb), jnp.float32),
        grid=(num_tiles,),
        in_specs=[
            pl.BlockSpec((1, tb), lambda i: (i, 0)),             # user ids tile
            pl.BlockSpec((1, tb), lambda i: (i, 0)),             # movie ids tile (offset)
            pl.BlockSpec((1, n_total), lambda i: (0, 0),         # folded table, resident
                         pipeline_mode=pl.Buffered(1)),
        ],
        out_specs=pl.BlockSpec((1, tb), lambda i: (i, 0)),       # lane-dense scores
        compiler_params=pltpu.CompilerParams(
            dimension_semantics=("parallel",),
            vmem_limit_bytes=vmem_limit),
    )(uidx, midx, s_all)

    # Lane-dense (num_tiles, TB) slab -> (B, 1), dropping batch padding.
    return out.reshape(padded, 1)[:batch]


def init_params(key, n_users, n_movies, n_embeddings=32):
    k1, k2, k3, k4, k5 = jax.random.split(key, 5)
    # nn.Embedding default init ~ N(0, 1); nn.Linear ~ U(-1/sqrt(fan_in), 1/sqrt(fan_in)).
    bound = 1.0 / jnp.sqrt(2.0 * n_embeddings)
    return {
        # Embedding tables stored feature-major (E, N): same contents as
        # nn.Embedding(N, E).weight transposed.
        "user_embed_t": jax.random.normal(k1, (n_embeddings, n_users), jnp.float32),
        "movie_embed_t": jax.random.normal(k2, (n_embeddings, n_movies), jnp.float32),
        # Linear(2E, 1) weight split into its user / movie halves, stored (E, 1).
        "w_u": jax.random.uniform(k3, (n_embeddings, 1), jnp.float32, -bound, bound),
        "w_m": jax.random.uniform(k4, (n_embeddings, 1), jnp.float32, -bound, bound),
        "b": jax.random.uniform(k5, (1,), jnp.float32, -bound, bound),
    }


def recsys_reference(users, movies, params):
    # Plain-JAX reference of the PyTorch module: gather -> concat -> Linear.
    ue = params["user_embed_t"].T[users]                           # (B, E)
    me = params["movie_embed_t"].T[movies]                         # (B, E)
    x = jnp.concatenate([ue, me], axis=1)                          # (B, 2E)
    w = jnp.concatenate([params["w_u"], params["w_m"]], axis=0)    # (2E, 1)
    return x @ w + params["b"]


if __name__ == "__main__":
    n_users, n_movies, n_embeddings, batch = 64, 128, 32, 8

    key = jax.random.PRNGKey(0)
    kp, ku, km = jax.random.split(key, 3)
    params = init_params(kp, n_users, n_movies, n_embeddings)

    users = jax.random.randint(ku, (batch,), 0, n_users, dtype=jnp.int32)
    movies = jax.random.randint(km, (batch,), 0, n_movies, dtype=jnp.int32)

    out = recsys_forward(users, movies, params)
    out = jax.block_until_ready(out)

    ref = recsys_reference(users, movies, params)
    assert out.shape == (batch, 1), out.shape
    assert jnp.allclose(out, ref, atol=1e-5, rtol=1e-5), (out, ref)

    print("KERNEL_OK")
</pallas_src>

<mosaic_0001>
module attributes {stable_mosaic.version = 11 : i64} {
  func.func @recsys_kernel(%arg0: i32, %arg1: memref<1x128xi32, #tpu.memory_space<vmem>>, %arg2: memref<1x128xi32, #tpu.memory_space<vmem>>, %arg3: memref<1x192xf32, #tpu.memory_space<vmem>>, %arg4: memref<1x128xf32, #tpu.memory_space<vmem>>) attributes {dimension_semantics = [#tpu.dimension_semantics<parallel>], iteration_bounds = array<i64: 1>, scalar_prefetch = 0 : i64, scratch_operands = 0 : i64, tpu.core_type = #tpu.core_type<tc>, window_params = [{transform_indices = @transform_0, window_bounds = array<i64: 1, 128>}, {transform_indices = @transform_1, window_bounds = array<i64: 1, 128>}, {pipeline_mode = #tpu.pipeline_mode<synchronous>, transform_indices = @transform_2, window_bounds = array<i64: 1, 192>}, {transform_indices = @transform_3, window_bounds = array<i64: 1, 128>}]} {
    %c0 = arith.constant 0 : index
    %c0_0 = arith.constant 0 : index
    %0 = vector.load %arg1[%c0, %c0_0] : memref<1x128xi32, #tpu.memory_space<vmem>>, vector<1x128xi32>
    %c0_1 = arith.constant 0 : index
    %c0_2 = arith.constant 0 : index
    %1 = vector.load %arg2[%c0_1, %c0_2] : memref<1x128xi32, #tpu.memory_space<vmem>>, vector<1x128xi32>
    %2 = tpu.iota {dimensions = array<i32: 0>} : vector<192x128xi32>
    %3 = vector.broadcast %0 : vector<1x128xi32> to vector<192x128xi32>
    %4 = arith.cmpi eq, %2, %3 : vector<192x128xi32>
    %5 = vector.broadcast %1 : vector<1x128xi32> to vector<192x128xi32>
    %6 = arith.cmpi eq, %2, %5 : vector<192x128xi32>
    %7 = arith.ori %4, %6 : vector<192x128xi1>
    %8 = arith.extui %7 : vector<192x128xi1> to vector<192x128xi32>
    %9 = arith.sitofp %8 : vector<192x128xi32> to vector<192x128xf32>
    %c0_3 = arith.constant 0 : index
    %c0_4 = arith.constant 0 : index
    %10 = vector.load %arg3[%c0_3, %c0_4] : memref<1x192xf32, #tpu.memory_space<vmem>>, vector<1x192xf32>
    %cst = arith.constant dense<0.000000e+00> : vector<1x128xf32>
    %11 = tpu.matmul %10, %9, %cst {dimension_numbers = #tpu.dot_dimension_numbers<[1], [0], [0], [1], [0, 0, 1, 1], [], []>} : vector<1x192xf32>, vector<192x128xf32>, vector<1x128xf32> -> vector<1x128xf32>
    %c0_5 = arith.constant 0 : index
    %c0_6 = arith.constant 0 : index
    %12 = vector.load %arg4[%c0_5, %c0_6] : memref<1x128xf32, #tpu.memory_space<vmem>>, vector<1x128xf32>
    tpu.vector_store %arg4[%c0_5, %c0_6], %11 {strides = array<i32>} : memref<1x128xf32, #tpu.memory_space<vmem>>, vector<1x128xf32>,
    return
  }
  func.func @transform_0(%arg0: i32) -> (i32, i32) {
    %c0_i32 = arith.constant 0 : i32
    %c0_i32_0 = arith.constant 0 : i32
    return %arg0, %c0_i32 : i32, i32
  }
  func.func @transform_1(%arg0: i32) -> (i32, i32) {
    %c0_i32 = arith.constant 0 : i32
    %c0_i32_0 = arith.constant 0 : i32
    return %arg0, %c0_i32 : i32, i32
  }
  func.func @transform_2(%arg0: i32) -> (i32, i32) {
    %c0_i32 = arith.constant 0 : i32
    %c0_i32_0 = arith.constant 0 : i32
    %c0_i32_1 = arith.constant 0 : i32
    return %c0_i32, %c0_i32_0 : i32, i32
  }
  func.func @transform_3(%arg0: i32) -> (i32, i32) {
    %c0_i32 = arith.constant 0 : i32
    %c0_i32_0 = arith.constant 0 : i32
    return %arg0, %c0_i32 : i32, i32
  }
}

</mosaic_0001>

<bundles_post_ra>
// kernel: tpu_custom_call.1
= control target key start
LH: loop header
LB: loop body
LE: loop exit
PB: predicated region body
PF: predicated region fallthrough
CT: control target
= control target key end

     0   :  { %8 = vsyncpa [#allocation3], 0  ;;  %s662_s0 = inlined_call_operand.hbm [shape: s32[1,128], index: 0, kind: input, shape index: {}]   ;;  %s663_s1 = inlined_call_operand.vmem [shape: s32[1,128], index: 1, kind: input, shape index: {}]   ;;  %s664_s2 = inlined_call_operand.vmem [shape: f32[1,192], index: 2, kind: input, shape index: {}]   ;;  %s665_s3 = inlined_call_operand.hbm [shape: f32[1,128], index: 3, kind: output, shape index: {}]  }
   0x1   :  { %9 = vsyncpa [#allocation4], 0  ;;  %s421_s12 = smov [#allocation2]   ;;  %s373_s16 = scalar_lea.hbm %s662_s0, 16 }
   0x2   :  { %s16_s13 = sshll.u32 %s421_s12, 4  ;;  %p374_p0 = scmp.ne.s32.totalorder %s662_s0, %s373_s16  ;;  %s17_s13 = int_to_ptr.vmem [resolvable:$true] %s16_s13 }
   0x3   :  { %p377_p1 = scmp.lt.u32.totalorder %s373_s16, %s662_s0 }
   0x5   :  { %p379_p2 = pnand %p377_p1, %p374_p0 }
   0x7   :  { %382 = shalt.err (!%p379_p2)
}
   0x8   :  { %s383_s21 = scalar_lea.vmem %s17_s13, 16  ;;  %s387_s22 = scalar_lea.vmem %s17_s13, 32 }
   0x9   :  { %p384_p3 = scmp.ne.s32.totalorder %s17_s13, %s383_s21  ;;  %p388_p4 = scmp.lt.s32.totalorder %s17_s13, %s17_s13 }
   0xa   :  { %p389_p5 = scmp.lt.s32.totalorder %s387_s22, %s383_s21 }
   0xc   :  { %p390_p6 = por %p389_p5, %p388_p4 }
   0xe   :  { %p391_p7 = pnand %p390_p6, %p384_p3 }
  0x10   :  { %394 = shalt.err (!%p391_p7)
}
  0x11   :  { %19 = dma.hbm_to_vmem [thread:$0]  %s662_s0, 16, %s17_s13, [#allocation3]  }
  0x12   :  { %417 = dma.done.wait [#allocation3], 16  }
  0x13   :  { %418 = vsyncadd [#allocation3], 4294967280  ;;  %v29_v0 = vlaneseq  ;;  %v422_v1 = vmov 0.0|0.0   ;;  %v463_v6 = vld [vmem:[#allocation2] ss:$0 sm:$0xff] }
  0x14   :  { %333 = vmatprep.subr.bf16.mxu0 %v422_v1  ;;  %v468_v7 = vld [vmem:[%s663_s1] ss:$0 sm:$0xff]  ;;  %v423_v11 = vmov 1.0|1.0  }
  0x15   :  { %v458_v2 = vshrl.u32 %v29_v0, 7  ;;  %v527_v21 = vld [vmem:[%s664_s2] sm:$0x3]  ;;  %s424_s2 = smov [#allocation5]  }
  0x16   :  { %s273_s27 = sshll.u32 %s424_s2, 4  ;;  %s274_s27 = int_to_ptr.vmem [resolvable:$true] %s273_s27 }
  0x17   :  { %v31_v3 = vadd.s32 8, %v458_v2  ;;  %v32_v4 = vadd.s32 16, %v458_v2  ;;  %v33_v5 = vadd.s32 24, %v458_v2  ;;  %v34_v8 = vadd.s32 32, %v458_v2  ;;  %s395_s28 = scalar_lea.vmem %s274_s27, 16  ;;  %s399_s29 = scalar_lea.vmem %s274_s27, 32 }
  0x18   :  { %vm58_vm0 = vcmp.eq.s32.totalorder %v458_v2, %v463_v6  ;;  %vm86_vm2 = vcmp.eq.s32.totalorder %v458_v2, %v468_v7  ;;  %v35_v9 = vadd.s32 40, %v458_v2  ;;  %v36_v10 = vadd.s32 48, %v458_v2  ;;  %p396_p8 = scmp.ne.s32.totalorder %s274_s27, %s395_s28  ;;  %p400_p9 = scmp.lt.s32.totalorder %s274_s27, %s274_s27 }
  0x19   :  { %vm59_vm1 = vcmp.eq.s32.totalorder %v31_v3, %v463_v6  ;;  %vm87_vm3 = vcmp.eq.s32.totalorder %v31_v3, %v468_v7  ;;  %vm110_vm4 = vmor %vm58_vm0, %vm86_vm2  ;;  %vm60_vm5 = vcmp.eq.s32.totalorder %v32_v4, %v463_v6  ;;  %vm88_vm6 = vcmp.eq.s32.totalorder %v32_v4, %v468_v7  ;;  %p401_p10 = scmp.lt.s32.totalorder %s399_s29, %s395_s28 }
  0x1a   :  { %vm111_vm7 = vmor %vm59_vm1, %vm87_vm3  ;;  %vm61_vm8 = vcmp.eq.s32.totalorder %v33_v5, %v463_v6  ;;  %vm89_vm9 = vcmp.eq.s32.totalorder %v33_v5, %v468_v7  ;;  %vm62_vm12 = vcmp.eq.s32.totalorder %v34_v8, %v463_v6  ;;  %vm90_vm13 = vcmp.eq.s32.totalorder %v34_v8, %v468_v7 }
  0x1b   :  { %vm334_vm10 = vmpackc.low %vm111_vm7, %vm110_vm4  ;;  %v37_v12 = vadd.s32 56, %v458_v2  ;;  %vm63_vm15 = vcmp.eq.s32.totalorder %v35_v9, %v463_v6  ;;  %vm91_vm0 = vcmp.eq.s32.totalorder %v35_v9, %v468_v7  ;;  %v38_v13 = vadd.s32 64, %v458_v2  ;;  %p402_p11 = por %p401_p10, %p400_p9 }
  0x1c   :  { %335 = vmatpush1.bf16.msk.msra.mxu0 %vm334_vm10, %v423_v11  ;;  %vm112_vm11 = vmor %vm60_vm5, %vm88_vm6  ;;  %vm64_vm3 = vcmp.eq.s32.totalorder %v36_v10, %v463_v6  ;;  %vm92_vm4 = vcmp.eq.s32.totalorder %v36_v10, %v468_v7  ;;  %v39_v15 = vadd.s32 72, %v458_v2  ;;  %v40_v17 = vadd.s32 80, %v458_v2 }
  0x1d   :  { %336 = vmatprep.subr.bf16.mxu0 %v422_v1  ;;  %vm113_vm14 = vmor %vm61_vm8, %vm89_vm9  ;;  %vm65_vm6 = vcmp.eq.s32.totalorder %v37_v12, %v463_v6  ;;  %vm93_vm7 = vcmp.eq.s32.totalorder %v37_v12, %v468_v7  ;;  %vm66_vm10 = vcmp.eq.s32.totalorder %v38_v13, %v463_v6  ;;  %v41_v19 = vadd.s32 88, %v458_v2  ;;  %p403_p12 = pnand %p402_p11, %p396_p8 }
  0x1e   :  { %vm337_vm1 = vmpackc.low %vm113_vm14, %vm112_vm11  ;;  %vm94_vm11 = vcmp.eq.s32.totalorder %v38_v13, %v468_v7  ;;  %vm95_vm14 = vcmp.eq.s32.totalorder %v39_v15, %v468_v7  ;;  %v42_v20 = vadd.s32 96, %v458_v2  ;;  %v43_v23 = vadd.s32 104, %v458_v2 }
  0x1f   :  { %vm491_vm2 = vmor %vm62_vm12, %vm90_vm13  ;;  %vm67_vm13 = vcmp.eq.s32.totalorder %v39_v15, %v463_v6  ;;  %v190_v24 = vsub.s32 1, %v458_v2  ;;  %v44_v28 = vadd.s32 112, %v458_v2  ;;  %v45_v29 = vadd.s32 120, %v458_v2 }
  0x20   :  { %338 = vmatpush1.bf16.msk.msra.mxu0 %vm337_vm1, %v423_v11  ;;  %vm115_vm5 = vmor %vm63_vm15, %vm91_vm0  ;;  %v46_v32 = vadd.s32 128, %v458_v2  ;;  %v47_v33 = vadd.s32 136, %v458_v2  ;;  %v48_v35 = vadd.s32 144, %v458_v2  ;;  %v49_v37 = vadd.s32 152, %v458_v2 }
  0x21   :  { %339 = vmatprep.subr.bf16.mxu0 %v422_v1  ;;  %vm340_vm8 = vmpackc.low %vm115_vm5, %vm491_vm2  ;;  %vm68_vm2 = vcmp.eq.s32.totalorder %v40_v17, %v463_v6  ;;  %vm69_vm5 = vcmp.eq.s32.totalorder %v41_v19, %v463_v6  ;;  %v191_v26 = vrot.slane %v527_v21, %v190_v24  ;;  %v50_v39 = vadd.s32 160, %v458_v2 }
  0x22   :  { %vm504_vm9 = vmor %vm64_vm3, %vm92_vm4  ;;  %vm96_vm3 = vcmp.eq.s32.totalorder %v40_v17, %v468_v7  ;;  %vm193_vm4 = vcmask 523264   ;;  %v51_v40 = vadd.s32 168, %v458_v2  ;;  %v52_v43 = vadd.s32 176, %v458_v2 }
  0x23   :  { %vm511_vm12 = vmor %vm65_vm6, %vm93_vm7  ;;  %vm97_vm6 = vcmp.eq.s32.totalorder %v41_v19, %v468_v7  ;;  %332 = vmatprep.mubr.msk.f32.mxu0 %vm193_vm4, %v191_v26  ;;  %vm101_vm4 = vcmp.eq.s32.totalorder %v45_v29, %v468_v7  ;;  %v53_v44 = vadd.s32 184, %v458_v2  ;;  %v186_v45 = vsub.s32 0, %v458_v2 }
  0x24   :  { %341 = vmatpush1.bf16.msk.msra.mxu0 %vm340_vm8, %v423_v11  ;;  %vm343_vm15 = vmpackc.low %vm511_vm12, %vm504_vm9  ;;  %vm70_vm8 = vcmp.eq.s32.totalorder %v42_v20, %v463_v6  ;;  %vm98_vm9 = vcmp.eq.s32.totalorder %v42_v20, %v468_v7  ;;  %vm99_vm12 = vcmp.eq.s32.totalorder %v43_v23, %v468_v7 }
  0x25   :  { %342 = vmatprep.subr.bf16.mxu0 %v422_v1  ;;  %vm530_vm0 = vmor %vm66_vm10, %vm94_vm11  ;;  %vm71_vm11 = vcmp.eq.s32.totalorder %v43_v23, %v463_v6  ;;  %v187_v46 = vrot.slane %v527_v21, %v186_v45 }
  0x26   :  { %vm536_vm1 = vmor %vm67_vm13, %vm95_vm14 }
  0x27   :  { %vm346_vm7 = vmpackc.low %vm536_vm1, %vm530_vm0  ;;  %vm72_vm1 = vcmp.eq.s32.totalorder %v44_v28, %v463_v6 }
  0x28   :  { %344 = vmatpush1.bf16.msk.msra.mxu0 %vm343_vm15, %v423_v11  ;;  %vm553_vm10 = vmor %vm68_vm2, %vm96_vm3  ;;  %vm100_vm2 = vcmp.eq.s32.totalorder %v44_v28, %v468_v7  ;;  %vm73_vm3 = vcmp.eq.s32.totalorder %v45_v29, %v463_v6 }
  0x29   :  { %345 = vmatprep.subr.bf16.mxu0 %v422_v1  ;;  %vm121_vm13 = vmor %vm69_vm5, %vm97_vm6 }
  0x2a   :  { %vm561_vm14 = vmor %vm70_vm8, %vm98_vm9  ;;  %vm74_vm8 = vcmp.eq.s32.totalorder %v46_v32, %v463_v6  ;;  %vm102_vm9 = vcmp.eq.s32.totalorder %v46_v32, %v468_v7 }
  0x2b   :  { %vm566_vm15 = vmor %vm71_vm11, %vm99_vm12  ;;  %vm103_vm11 = vcmp.eq.s32.totalorder %v47_v33, %v468_v7 }
  0x2c   :  { %347 = vmatpush1.bf16.msk.msra.mxu0 %vm346_vm7, %v423_v11  ;;  %vm349_vm0 = vmpackc.low %vm121_vm13, %vm553_vm10  ;;  %vm75_vm10 = vcmp.eq.s32.totalorder %v47_v33, %v463_v6  ;;  %vm76_vm13 = vcmp.eq.s32.totalorder %v48_v35, %v463_v6 }
  0x2d   :  { %348 = vmatprep.subr.bf16.mxu0 %v422_v1  ;;  %vm352_vm5 = vmpackc.low %vm566_vm15, %vm561_vm14  ;;  %vm104_vm14 = vcmp.eq.s32.totalorder %v48_v35, %v468_v7 }
  0x2e   :  { %vm584_vm6 = vmor %vm72_vm1, %vm100_vm2  ;;  %vm105_vm1 = vcmp.eq.s32.totalorder %v49_v37, %v468_v7 }
  0x2f   :  { %vm590_vm7 = vmor %vm73_vm3, %vm101_vm4 }
  0x30   :  { %350 = vmatpush1.bf16.msk.msra.mxu0 %vm349_vm0, %v423_v11  ;;  %vm355_vm12 = vmpackc.low %vm590_vm7, %vm584_vm6  ;;  %vm77_vm0 = vcmp.eq.s32.totalorder %v49_v37, %v463_v6  ;;  %vm78_vm6 = vcmp.eq.s32.totalorder %v50_v39, %v463_v6  ;;  %vm106_vm7 = vcmp.eq.s32.totalorder %v50_v39, %v468_v7 }
  0x31   :  { %351 = vmatprep.subr.bf16.mxu0 %v422_v1  ;;  %vm607_vm15 = vmor %vm74_vm8, %vm102_vm9  ;;  %vm79_vm8 = vcmp.eq.s32.totalorder %v51_v40, %v463_v6  ;;  %vm107_vm9 = vcmp.eq.s32.totalorder %v51_v40, %v468_v7 }
  0x32   :  { %vm127_vm2 = vmor %vm75_vm10, %vm103_vm11 }
  0x33   :  { %vm615_vm3 = vmor %vm76_vm13, %vm104_vm14  ;;  %vm80_vm13 = vcmp.eq.s32.totalorder %v52_v43, %v463_v6  ;;  %vm108_vm14 = vcmp.eq.s32.totalorder %v52_v43, %v468_v7 }
  0x34   :  { %353 = vmatpush1.bf16.msk.msra.mxu0 %vm352_vm5, %v423_v11  ;;  %vm620_vm4 = vmor %vm77_vm0, %vm105_vm1  ;;  %vm109_vm0 = vcmp.eq.s32.totalorder %v53_v44, %v468_v7 }
  0x35   :  { %354 = vmatprep.subr.bf16.mxu0 %v422_v1  ;;  %vm358_vm5 = vmpackc.low %vm127_vm2, %vm607_vm15  ;;  %vm81_vm15 = vcmp.eq.s32.totalorder %v53_v44, %v463_v6 }
  0x36   :  { %vm361_vm10 = vmpackc.low %vm620_vm4, %vm615_vm3 }
  0x37   :  { %vm130_vm11 = vmor %vm78_vm6, %vm106_vm7 }
  0x38   :  { %356 = vmatpush1.bf16.msk.msra.mxu0 %vm355_vm12, %v423_v11  ;;  %vm131_vm12 = vmor %vm79_vm8, %vm107_vm9 }
  0x39   :  { %357 = vmatprep.subr.bf16.mxu0 %v422_v1  ;;  %vm364_vm1 = vmpackc.low %vm131_vm12, %vm130_vm11 }
  0x3a   :  { %vm132_vm2 = vmor %vm80_vm13, %vm108_vm14 }
  0x3b   :  { %vm133_vm3 = vmor %vm81_vm15, %vm109_vm0 }
  0x3c   :  { %359 = vmatpush1.bf16.msk.msra.mxu0 %vm358_vm5, %v423_v11  ;;  %vm367_vm4 = vmpackc.low %vm133_vm3, %vm132_vm2 }
  0x3d   :  { %360 = vmatprep.subr.bf16.mxu0 %v422_v1 }
  0x40   :  { %362 = vmatpush1.bf16.msk.msra.mxu0 %vm361_vm10, %v423_v11 }
  0x41   :  { %363 = vmatprep.subr.bf16.mxu0 %v422_v1 }
  0x44   :  { %365 = vmatpush1.bf16.msk.msra.mxu0 %vm364_vm1, %v423_v11 }
  0x45   :  { %366 = vmatprep.subr.bf16.mxu0 %v422_v1 }
  0x48   :  { %368 = vmatpush1.bf16.msk.msra.mxu0 %vm367_vm4, %v423_v11 }
  0x4b   :  { %261 = vmatmul.mubr.f32.vlgmr.msra.gmra.mrb[0].mxu0 %v187_v46 }
 0x11e   :  { %v262_v47 = vpop.f32.mrb[0].mxu0 }
 0x11f   :  { %266 = vst [vmem:[#allocation5] sm:$0x1] %v262_v47  ;;  %v264_v48 = vpop.f32.mrb[1].mxu0 }
 0x120   :  { %406 = shalt.err (!%p403_p12)
}
 0x121   :  { %s407_s5 = scalar_lea.hbm %s665_s3, 16 }
 0x122   :  { %p408_p13 = scmp.ne.s32.totalorder %s665_s3, %s407_s5  ;;  %p411_p0 = scmp.lt.u32.totalorder %s407_s5, %s665_s3 }
 0x124   :  { %p413_p1 = pnand %p411_p0, %p408_p13 }
 0x126   :  { %416 = shalt.err (!%p413_p1)
}
 0x127   :  { %276 = dma.vmem_to_hbm [thread:$0]  %s274_s27, 16, %s665_s3, [#allocation4]  }
 0x128   :  { %419 = dma.done.wait [#allocation4], 16  }
 0x129   :  { %420 = vsyncadd [#allocation4], 4294967280 }
 0x12a   :  { %280 = vsyncpa [#allocation3], 1 }
 0x12b   :  { %281 = vsyncpa [#allocation4], 1 }

</bundles_post_ra>
